<compile_context>
chip_gen: v5e
topology: v5e:2x2
jax: 0.10.0
libtpu: 0.0.40
codegen_flags: <defaults>
</compile_context>

<pallas_src>
import functools

import jax
import jax.numpy as jnp
from jax.experimental import pallas as pl
from jax.experimental.pallas import tpu as pltpu

_LANES = 512              # lane-dense last dim (multiple of 128 -> unmasked vst)
_MAX_BLOCK_ROWS = 1024    # 1024 * 512 * 4 B = 2 MiB per f32 block (keep; VALU-bound)
_TARGET_BLOCKS = 8        # >= 2x the 2 TensorCores on v7x -> both cores get work

# murmur3 fmix32 / golden-ratio constants (uint32).
_MIX1 = 0x85EBCA6B
_MIX2 = 0xC2B2AE35
_GOLDEN = 0x9E3779B1


def _noise_dtype():
    """bf16 noise math on v6e/v7x (2 elems per VALU op); f32 on v5e and older."""
    try:
        kind = jax.devices()[0].device_kind.lower()
    except Exception:
        return jnp.float32
    if any(old in kind for old in ("v2", "v3", "v4", "v5")):
        return jnp.float32
    return jnp.bfloat16


def _speckle_kernel(seed_ref, x_ref, o_ref, *, scale, compute_dtype):
    """o = x + x * t,  t = scale * erfinv(2u-1),  u from a counter hash."""
    block_rows, lanes = x_ref.shape
    shift = int(lanes).bit_length() - 1          # lanes == 512 -> 9 (static)
    i = pl.program_id(0)

    # Per-block seed on the *scalar* unit: distinct hash stream per block
    # without a per-element global-offset add.
    block_seed = (seed_ref[0] + i).astype(jnp.uint32) * jnp.uint32(_GOLDEN)

    # Block-local flat index (distinct per element within the block).
    row = jax.lax.broadcasted_iota(jnp.int32, (block_rows, lanes), 0)
    col = jax.lax.broadcasted_iota(jnp.int32, (block_rows, lanes), 1)
    local = jnp.left_shift(row, shift) + col

    # murmur3 fmix32 avalanche, uint32: native logical shifts, wrapping muls.
    h = pltpu.bitcast(local, jnp.uint32) + block_seed
    h = h ^ (h >> jnp.uint32(16))
    h = h * jnp.uint32(_MIX1)
    h = h ^ (h >> jnp.uint32(13))
    h = h * jnp.uint32(_MIX2)
    h = h ^ (h >> jnp.uint32(16))

    # 23 mantissa bits -> x = 2u - 1 strictly inside (-1, 1), fused as fma.
    bits = h & jnp.uint32(0x007FFFFF)
    x = (bits.astype(jnp.float32) * jnp.float32(2.0 ** -22)
         + jnp.float32(2.0 ** -23 - 1.0)).astype(compute_dtype)

    one = jnp.asarray(1.0, compute_dtype)
    w = -jnp.log((one - x) * (one + x))
    # Clamp so only the small-w branch is needed (clips ~0.34% of draws at
    # |2.93 sigma|) and so the x == +-1 / log(0) corner is harmless.
    w = jnp.minimum(w, jnp.asarray(5.0, compute_dtype))
    wd = w - jnp.asarray(2.5, compute_dtype)

    # Giles (2012) small-w erfinv Horner chain (single branch).
    p = jnp.asarray(2.81022636e-08, compute_dtype)
    for c in (3.43273939e-07, -3.5233877e-06, -4.39150654e-06, 2.1858087e-04,
              -1.25372503e-03, -4.17768164e-03, 2.46640727e-01, 1.50140941e+00):
        p = p * wd + jnp.asarray(c, compute_dtype)

    # noise = sqrt(2*var) * erfinv(x); sqrt(2) and sqrt(var) folded into scale.
    t = (p * x) * jnp.asarray(scale, compute_dtype)

    img = x_ref[...].astype(jnp.float32)
    o_ref[...] = (img + img * t.astype(jnp.float32)).astype(o_ref.dtype)


def speckle(img, *, mean=0, var=1.0, seed=1):
    """JAX/Pallas equivalent of Speckle.forward: img + img * (var**0.5 * N(0,1)).

    `mean` is stored but unused by the PyTorch forward (torch.randn is
    zero-mean); mirrored here.  `seed` is a runtime SMEM input, so a fresh
    seed per call gives fresh noise without recompiling.
    """
    del mean  # unused, matching the reference forward pass
    orig_shape = img.shape
    total = int(img.size)
    # TODO(synk): torch.randn's exact RNG stream is not reproducible here; the
    # noise matches in distribution (N(0, var)) but not bit-for-bit.

    # Lane-dense (rows, 512) view.  When total % 512 == 0 (typical C*H*W image
    # stacks) this reshape is free; otherwise pad the flat tail once.
    pad = (-total) % _LANES
    if pad:
        flat = jnp.pad(img.reshape(-1), (0, pad))
    else:
        flat = img.reshape(-1)
    rows = (total + pad) // _LANES
    x2d = flat.reshape(rows, _LANES)

    # Row tiling: blocks are multiples of 8 sublanes, aim for >= _TARGET_BLOCKS
    # blocks (v7x 2-TC balance + DMA/compute overlap), cap at ~2 MiB.  The last
    # block may be partial; Pallas clamps boundary reads/writes.
    if rows <= 8:
        block_rows = rows                       # single full-array block
    else:
        block_rows = -(-rows // _TARGET_BLOCKS)
        block_rows = -(-block_rows // 8) * 8    # round up to sublane multiple
        block_rows = min(block_rows, _MAX_BLOCK_ROWS)
    num_blocks = -(-rows // block_rows)

    seed_arr = jnp.asarray([seed], dtype=jnp.int32)
    kernel = functools.partial(
        _speckle_kernel,
        scale=float((2.0 * var) ** 0.5),
        compute_dtype=_noise_dtype(),
    )

    out2d = pl.pallas_call(
        kernel,
        out_shape=jax.ShapeDtypeStruct(x2d.shape, x2d.dtype),
        grid=(num_blocks,),
        in_specs=[
            pl.BlockSpec(memory_space=pltpu.MemorySpace.SMEM),       # seed
            pl.BlockSpec((block_rows, _LANES), lambda i: (i, 0)),    # image rows
        ],
        out_specs=pl.BlockSpec((block_rows, _LANES), lambda i: (i, 0)),
        compiler_params=pltpu.CompilerParams(
            dimension_semantics=("parallel",),   # v7x: 2 TCs share the grid
            vmem_limit_bytes=32 * 1024 * 1024,
        ),
        cost_estimate=pl.CostEstimate(
            flops=55 * rows * _LANES,
            transcendentals=rows * _LANES,
            bytes_accessed=2 * rows * _LANES * x2d.dtype.itemsize + 4,
        ),
    )(seed_arr, x2d)

    out_flat = out2d.reshape(-1)
    if pad:
        out_flat = out_flat[:total]
    return out_flat.reshape(orig_shape)


if __name__ == "__main__":
    key = jax.random.PRNGKey(0)
    # Small NCHW image, consistent with the module's [..., C, H, W] contract.
    x = jax.random.normal(key, (2, 4, 16, 16), dtype=jnp.float32)

    out = speckle(x, mean=0, var=1.0, seed=1)
    out = jax.block_until_ready(out)

    assert out.shape == x.shape and out.dtype == x.dtype

    # out = x * (1 + noise)  =>  recovered noise should look roughly N(0, 1).
    safe_x = jnp.where(x == 0, 1.0, x)
    noise = (out - x) / safe_x
    assert bool(jnp.all(jnp.isfinite(noise)))
    assert abs(float(jnp.mean(noise))) < 0.25
    assert 0.6 < float(jnp.std(noise)) < 1.4

    print("KERNEL_OK")
</pallas_src>

<mosaic_0001>
module attributes {stable_mosaic.version = 11 : i64} {
  func.func @_speckle_kernel(%arg0: i32, %arg1: memref<1xi32, #tpu.memory_space<smem>>, %arg2: memref<4x512xf32, #tpu.memory_space<vmem>>, %arg3: memref<4x512xf32, #tpu.memory_space<vmem>>) attributes {dimension_semantics = [#tpu.dimension_semantics<parallel>], iteration_bounds = array<i64: 1>, scalar_prefetch = 0 : i64, scratch_operands = 0 : i64, tpu.core_type = #tpu.core_type<tc>, window_params = [{transform_indices = @transform_0, window_bounds = array<i64: 1>}, {transform_indices = @transform_1, window_bounds = array<i64: 4, 512>}, {transform_indices = @transform_2, window_bounds = array<i64: 4, 512>}]} {
    %c0 = arith.constant 0 : index
    %0 = memref.load %arg1[%c0] : memref<1xi32, #tpu.memory_space<smem>>
    %1 = arith.addi %0, %arg0 : i32
    %c-1640531535_i32 = arith.constant -1640531535 : i32
    %2 = arith.muli %1, %c-1640531535_i32 : i32
    %3 = tpu.iota {dimensions = array<i32: 0>} : vector<4x512xi32>
    %4 = tpu.iota {dimensions = array<i32: 1>} : vector<4x512xi32>
    %c9_i32 = arith.constant 9 : i32
    %5 = vector.broadcast %c9_i32 : i32 to vector<4x512xi32>
    %6 = arith.shli %3, %5 : vector<4x512xi32>
    %7 = arith.addi %6, %4 : vector<4x512xi32>
    %8 = tpu.bitcast %7 : vector<4x512xi32> -> vector<4x512xi32>
    %9 = vector.broadcast %2 : i32 to vector<4x512xi32>
    %10 = arith.addi %8, %9 : vector<4x512xi32>
    %c16_i32 = arith.constant 16 : i32
    %11 = vector.broadcast %c16_i32 : i32 to vector<4x512xi32>
    %12 = arith.shrui %10, %11 : vector<4x512xi32>
    %13 = arith.xori %10, %12 : vector<4x512xi32>
    %c-2048144789_i32 = arith.constant -2048144789 : i32
    %14 = vector.broadcast %c-2048144789_i32 : i32 to vector<4x512xi32>
    %15 = arith.muli %13, %14 : vector<4x512xi32>
    %c13_i32 = arith.constant 13 : i32
    %16 = vector.broadcast %c13_i32 : i32 to vector<4x512xi32>
    %17 = arith.shrui %15, %16 : vector<4x512xi32>
    %18 = arith.xori %15, %17 : vector<4x512xi32>
    %c-1028477387_i32 = arith.constant -1028477387 : i32
    %19 = vector.broadcast %c-1028477387_i32 : i32 to vector<4x512xi32>
    %20 = arith.muli %18, %19 : vector<4x512xi32>
    %c16_i32_0 = arith.constant 16 : i32
    %21 = vector.broadcast %c16_i32_0 : i32 to vector<4x512xi32>
    %22 = arith.shrui %20, %21 : vector<4x512xi32>
    %23 = arith.xori %20, %22 : vector<4x512xi32>
    %c8388607_i32 = arith.constant 8388607 : i32
    %24 = vector.broadcast %c8388607_i32 : i32 to vector<4x512xi32>
    %25 = arith.andi %23, %24 : vector<4x512xi32>
    %26 = arith.uitofp %25 : vector<4x512xi32> to vector<4x512xf32>
    %cst = arith.constant 2.38418579E-7 : f32
    %27 = vector.broadcast %cst : f32 to vector<4x512xf32>
    %28 = arith.mulf %26, %27 : vector<4x512xf32>
    %cst_1 = arith.constant -0.99999988 : f32
    %29 = vector.broadcast %cst_1 : f32 to vector<4x512xf32>
    %30 = arith.addf %28, %29 : vector<4x512xf32>
    %31 = arith.truncf %30 : vector<4x512xf32> to vector<4x512xbf16>
    %cst_2 = arith.constant 1.000000e+00 : bf16
    %32 = vector.broadcast %cst_2 : bf16 to vector<4x512xbf16>
    %33 = arith.subf %32, %31 : vector<4x512xbf16>
    %cst_3 = arith.constant 1.000000e+00 : bf16
    %34 = vector.broadcast %cst_3 : bf16 to vector<4x512xbf16>
    %35 = arith.addf %34, %31 : vector<4x512xbf16>
    %36 = arith.mulf %33, %35 : vector<4x512xbf16>
    %37 = math.log %36 : vector<4x512xbf16>
    %cst_4 = arith.constant 0.000000e+00 : bf16
    %38 = vector.broadcast %cst_4 : bf16 to vector<4x512xbf16>
    %39 = arith.subf %38, %37 : vector<4x512xbf16>
    %cst_5 = arith.constant 5.000000e+00 : bf16
    %40 = vector.broadcast %cst_5 : bf16 to vector<4x512xbf16>
    %41 = arith.minimumf %39, %40 : vector<4x512xbf16>
    %cst_6 = arith.constant 2.500000e+00 : bf16
    %42 = vector.broadcast %cst_6 : bf16 to vector<4x512xbf16>
    %43 = arith.subf %41, %42 : vector<4x512xbf16>
    %cst_7 = arith.constant 2.805610e-08 : bf16
    %44 = vector.broadcast %cst_7 : bf16 to vector<4x512xbf16>
    %45 = arith.mulf %44, %43 : vector<4x512xbf16>
    %cst_8 = arith.constant 3.427270e-07 : bf16
    %46 = vector.broadcast %cst_8 : bf16 to vector<4x512xbf16>
    %47 = arith.addf %45, %46 : vector<4x512xbf16>
    %48 = arith.mulf %47, %43 : vector<4x512xbf16>
    %cst_9 = arith.constant -3.516670e-06 : bf16
    %49 = vector.broadcast %cst_9 : bf16 to vector<4x512xbf16>
    %50 = arith.addf %48, %49 : vector<4x512xbf16>
    %51 = arith.mulf %50, %43 : vector<4x512xbf16>
    %cst_10 = arith.constant -4.380940e-06 : bf16
    %52 = vector.broadcast %cst_10 : bf16 to vector<4x512xbf16>
    %53 = arith.addf %51, %52 : vector<4x512xbf16>
    %54 = arith.mulf %53, %43 : vector<4x512xbf16>
    %cst_11 = arith.constant 2.183910e-04 : bf16
    %55 = vector.broadcast %cst_11 : bf16 to vector<4x512xbf16>
    %56 = arith.addf %54, %55 : vector<4x512xbf16>
    %57 = arith.mulf %56, %43 : vector<4x512xbf16>
    %cst_12 = arith.constant -1.251220e-03 : bf16
    %58 = vector.broadcast %cst_12 : bf16 to vector<4x512xbf16>
    %59 = arith.addf %57, %58 : vector<4x512xbf16>
    %60 = arith.mulf %59, %43 : vector<4x512xbf16>
    %cst_13 = arith.constant -4.180910e-03 : bf16
    %61 = vector.broadcast %cst_13 : bf16 to vector<4x512xbf16>
    %62 = arith.addf %60, %61 : vector<4x512xbf16>
    %63 = arith.mulf %62, %43 : vector<4x512xbf16>
    %cst_14 = arith.constant 2.470700e-01 : bf16
    %64 = vector.broadcast %cst_14 : bf16 to vector<4x512xbf16>
    %65 = arith.addf %63, %64 : vector<4x512xbf16>
    %66 = arith.mulf %65, %43 : vector<4x512xbf16>
    %cst_15 = arith.constant 1.500000e+00 : bf16
    %67 = vector.broadcast %cst_15 : bf16 to vector<4x512xbf16>
    %68 = arith.addf %66, %67 : vector<4x512xbf16>
    %69 = arith.mulf %68, %31 : vector<4x512xbf16>
    %cst_16 = arith.constant 1.414060e+00 : bf16
    %70 = vector.broadcast %cst_16 : bf16 to vector<4x512xbf16>
    %71 = arith.mulf %69, %70 : vector<4x512xbf16>
    %c0_17 = arith.constant 0 : index
    %c0_18 = arith.constant 0 : index
    %72 = vector.load %arg2[%c0_17, %c0_18] : memref<4x512xf32, #tpu.memory_space<vmem>>, vector<4x512xf32>
    %73 = arith.extf %71 : vector<4x512xbf16> to vector<4x512xf32>
    %74 = arith.mulf %72, %73 : vector<4x512xf32>
    %75 = arith.addf %72, %74 : vector<4x512xf32>
    %c0_19 = arith.constant 0 : index
    %c0_20 = arith.constant 0 : index
    %76 = vector.load %arg3[%c0_19, %c0_20] : memref<4x512xf32, #tpu.memory_space<vmem>>, vector<4x512xf32>
    tpu.vector_store %arg3[%c0_19, %c0_20], %75 {strides = array<i32>} : memref<4x512xf32, #tpu.memory_space<vmem>>, vector<4x512xf32>,
    return
  }
  func.func @transform_0(%arg0: i32) -> i32 {
    %c0_i32 = arith.constant 0 : i32
    %c0_i32_0 = arith.constant 0 : i32
    return %c0_i32 : i32
  }
  func.func @transform_1(%arg0: i32) -> (i32, i32) {
    %c0_i32 = arith.constant 0 : i32
    %c0_i32_0 = arith.constant 0 : i32
    return %arg0, %c0_i32 : i32, i32
  }
  func.func @transform_2(%arg0: i32) -> (i32, i32) {
    %c0_i32 = arith.constant 0 : i32
    %c0_i32_0 = arith.constant 0 : i32
    return %arg0, %c0_i32 : i32, i32
  }
}

</mosaic_0001>

<bundles_post_ra>
// kernel: tpu_custom_call.1
= control target key start
LH: loop header
LB: loop body
LE: loop exit
PB: predicated region body
PF: predicated region fallthrough
CT: control target
= control target key end

     0   :  { %8 = vsyncpa [#allocation4], 0  ;;  %s563_s0 = inlined_call_operand.<no memory space> [shape: s32[1], index: 0, kind: input, shape index: {}]   ;;  %s564_s1 = inlined_call_operand.hbm [shape: f32[4,512], index: 1, kind: input, shape index: {}]   ;;  %s565_s2 = inlined_call_operand.hbm [shape: f32[4,512], index: 2, kind: output, shape index: {}]  }
   0x1   :  { %9 = vsyncpa [#allocation5], 0  ;;  %s17_s11 = sshll.u32 %s564_s1, 4  ;;  %s477_s12 = smov [#allocation3]   ;;  %s18_s11 = int_to_ptr.hbm [resolvable:$true] %s17_s11 }
   0x2   :  { %s19_s13 = sshll.u32 %s477_s12, 4  ;;  %s20_s13 = int_to_ptr.vmem [resolvable:$true] %s19_s13 }
   0x3   :  { %22 = dma.hbm_to_vmem [thread:$0]  %s18_s11, 256, %s20_s13, [#allocation4]  }
   0x4   :  { %473 = dma.done.wait [#allocation4], 256  }
   0x5   :  { %474 = vsyncadd [#allocation4], 4294967040  ;;  %v30_v0 = vlaneseq  ;;  %s29_s16 = smul.u32 2654435761, %s563_s0  ;;  %vm383_vm0 = vcmask 1043456   ;;  %s478_s0 = smov [#allocation6]  }
   0x6   :  { %s399_s1 = sshll.u32 %s478_s0, 4  ;;  %s401_s19 = sshll.u32 %s565_s2, 4  ;;  %s400_s1 = int_to_ptr.vmem [resolvable:$true] %s399_s1  ;;  %s402_s19 = int_to_ptr.hbm [resolvable:$true] %s401_s19 }
   0x7   :  { %v31_v1 = vshrl.u32 %v30_v0, 7  ;;  %v33_v2 = vand.u32 127, %v30_v0  ;;  %v42_v7 = vstv %s29_s16 }
   0x9   :  { %v34_v3 = vadd.s32 128, %v33_v2  ;;  %v35_v4 = vadd.s32 256, %v33_v2  ;;  %v36_v5 = vadd.s32 384, %v33_v2  ;;  %v37_v6 = vshll.u32 %v31_v1, 9 }
   0xb   :  { %v38_v8 = vadd.s32 %v37_v6, %v33_v2  ;;  %v39_v9 = vadd.s32 %v37_v6, %v34_v3  ;;  %v40_v10 = vadd.s32 %v37_v6, %v35_v4  ;;  %v41_v11 = vadd.s32 %v37_v6, %v36_v5 }
   0xd   :  { %v43_v12 = vadd.s32 %v42_v7, %v38_v8  ;;  %v44_v13 = vadd.s32 %v42_v7, %v39_v9  ;;  %v45_v14 = vadd.s32 %v42_v7, %v40_v10  ;;  %v46_v15 = vadd.s32 %v42_v7, %v41_v11 }
   0xf   :  { %v47_v16 = vshrl.u32 %v43_v12, 16  ;;  %v48_v17 = vshrl.u32 %v44_v13, 16  ;;  %v49_v18 = vshrl.u32 %v45_v14, 16  ;;  %v50_v19 = vshrl.u32 %v46_v15, 16 }
  0x11   :  { %v51_v20 = vxor.u32 %v47_v16, %v43_v12  ;;  %v52_v21 = vxor.u32 %v48_v17, %v44_v13  ;;  %v53_v22 = vxor.u32 %v49_v18, %v45_v14  ;;  %v54_v23 = vxor.u32 %v50_v19, %v46_v15 }
  0x13   :  { %v55_v24 = vmul.u32 2246822507, %v51_v20  ;;  %v56_v25 = vmul.u32 2246822507, %v52_v21  ;;  %v57_v26 = vmul.u32 2246822507, %v53_v22 }
  0x14   :  { %v58_v27 = vmul.u32 2246822507, %v54_v23 }
  0x15   :  { %v59_v28 = vshrl.u32 %v55_v24, 13  ;;  %v60_v29 = vshrl.u32 %v56_v25, 13  ;;  %v61_v30 = vshrl.u32 %v57_v26, 13 }
  0x16   :  { %v62_v31 = vshrl.u32 %v58_v27, 13 }
  0x17   :  { %v63_v32 = vxor.u32 %v59_v28, %v55_v24  ;;  %v64_v33 = vxor.u32 %v60_v29, %v56_v25  ;;  %v65_v34 = vxor.u32 %v61_v30, %v57_v26 }
  0x18   :  { %v66_v35 = vxor.u32 %v62_v31, %v58_v27 }
  0x19   :  { %v67_v36 = vmul.u32 3266489909, %v63_v32  ;;  %v68_v37 = vmul.u32 3266489909, %v64_v33  ;;  %v69_v38 = vmul.u32 3266489909, %v65_v34 }
  0x1a   :  { %v70_v39 = vmul.u32 3266489909, %v66_v35 }
  0x1b   :  { %v71_v40 = vshrl.u32 %v67_v36, 16  ;;  %v72_v41 = vshrl.u32 %v68_v37, 16  ;;  %v73_v42 = vshrl.u32 %v69_v38, 16 }
  0x1c   :  { %v74_v43 = vshrl.u32 %v70_v39, 16 }
  0x1d   :  { %v75_v44 = vxor.u32 %v71_v40, %v67_v36  ;;  %v76_v45 = vxor.u32 %v72_v41, %v68_v37  ;;  %v77_v46 = vxor.u32 %v73_v42, %v69_v38 }
  0x1e   :  { %v78_v47 = vxor.u32 %v74_v43, %v70_v39 }
  0x1f   :  { %v79_v48 = vand.u32 8388607, %v75_v44  ;;  %v80_v49 = vand.u32 8388607, %v76_v45  ;;  %v81_v50 = vand.u32 8388607, %v77_v46 }
  0x20   :  { %v82_v51 = vand.u32 8388607, %v78_v47 }
  0x21   :  { %v83_v52 = vshrl.u32 %v79_v48, 16  ;;  %v84_v53 = vand.u32 65535, %v79_v48  ;;  %v89_v54 = vshrl.u32 %v80_v49, 16  ;;  %v90_v55 = vand.u32 65535, %v80_v49 }
  0x22   :  { %v95_v56 = vshrl.u32 %v81_v50, 16  ;;  %v96_v57 = vand.u32 65535, %v81_v50  ;;  %v101_v58 = vshrl.u32 %v82_v51, 16  ;;  %v102_v59 = vand.u32 65535, %v82_v51 }
  0x23   :  { %v85_v60 = vcvt.s32.f32 %v83_v52  ;;  %v87_v61 = vcvt.s32.f32 %v84_v53  ;;  %v91_v62 = vcvt.s32.f32 %v89_v54  ;;  %v93_v63 = vcvt.s32.f32 %v90_v55 }
  0x24   :  { %v97_v0 = vcvt.s32.f32 %v95_v56  ;;  %v99_v1 = vcvt.s32.f32 %v96_v57  ;;  %v103_v2 = vcvt.s32.f32 %v101_v58  ;;  %v105_v3 = vcvt.s32.f32 %v102_v59 }
  0x25   :  { %v86_v4 = vmul.f32 65536.0, %v85_v60  ;;  %v92_v5 = vmul.f32 65536.0, %v91_v62 }
  0x26   :  { %v98_v6 = vmul.f32 65536.0, %v97_v0  ;;  %v104_v7 = vmul.f32 65536.0, %v103_v2 }
  0x27   :  { %v88_v8 = vadd.f32 %v87_v61, %v86_v4  ;;  %v94_v9 = vadd.f32 %v93_v63, %v92_v5 }
  0x28   :  { %v100_v10 = vadd.f32 %v99_v1, %v98_v6  ;;  %v106_v11 = vadd.f32 %v105_v3, %v104_v7 }
  0x29   :  { %v107_v12 = vmul.f32 2.3841858e-07, %v88_v8  ;;  %v108_v13 = vmul.f32 2.3841858e-07, %v94_v9 }
  0x2a   :  { %v109_v14 = vmul.f32 2.3841858e-07, %v100_v10  ;;  %v110_v15 = vmul.f32 2.3841858e-07, %v106_v11 }
  0x2b   :  { %v111_v16 = vadd.f32 -0.9999999, %v107_v12  ;;  %v112_v17 = vadd.f32 -0.9999999, %v108_v13 }
  0x2c   :  { %v113_v18 = vadd.f32 -0.9999999, %v109_v14  ;;  %v114_v19 = vadd.f32 -0.9999999, %v110_v15 }
  0x2d   :  { %v115_v20 = vpack.c.bf16 %v112_v17, %v111_v16 }
  0x2e   :  { %v116_v21 = vpack.c.bf16 %v114_v19, %v113_v18 }
  0x2f   :  { %v500_v22 = vunpack.c.l.bf16 %v115_v20  ;;  %v502_v23 = vunpack.c.h.bf16 %v115_v20 }
  0x30   :  { %v504_v24 = vunpack.c.l.bf16 %v116_v21  ;;  %v506_v25 = vunpack.c.h.bf16 %v116_v21 }
  0x31   :  { %v121_v26 = vsub.f32 1.0, %v500_v22  ;;  %v122_v27 = vsub.f32 1.0, %v502_v23  ;;  %v127_v28 = vadd.f32 1.0, %v500_v22  ;;  %v128_v29 = vadd.f32 1.0, %v502_v23 }
  0x32   :  { %v123_v30 = vsub.f32 1.0, %v504_v24  ;;  %v124_v31 = vsub.f32 1.0, %v506_v25  ;;  %v129_v32 = vadd.f32 1.0, %v504_v24  ;;  %v130_v33 = vadd.f32 1.0, %v506_v25 }
  0x33   :  { %v125_v34 = vpack.c.bf16 %v122_v27, %v121_v26  ;;  %v131_v35 = vpack.c.bf16 %v128_v29, %v127_v28 }
  0x34   :  { %v126_v36 = vpack.c.bf16 %v124_v31, %v123_v30  ;;  %v132_v37 = vpack.c.bf16 %v130_v33, %v129_v32 }
  0x35   :  { %v133_v38 = vunpack.c.l.bf16 %v125_v34  ;;  %v134_v39 = vunpack.c.h.bf16 %v125_v34  ;;  %v137_v40 = vunpack.c.l.bf16 %v131_v35  ;;  %v138_v41 = vunpack.c.h.bf16 %v131_v35 }
  0x36   :  { %v135_v42 = vunpack.c.l.bf16 %v126_v36  ;;  %v136_v43 = vunpack.c.h.bf16 %v126_v36  ;;  %v139_v44 = vunpack.c.l.bf16 %v132_v37  ;;  %v140_v45 = vunpack.c.h.bf16 %v132_v37 }
  0x37   :  { %v141_v46 = vmul.f32 %v137_v40, %v133_v38  ;;  %v142_v47 = vmul.f32 %v138_v41, %v134_v39 }
  0x38   :  { %v143_v48 = vmul.f32 %v139_v44, %v135_v42  ;;  %v144_v49 = vmul.f32 %v140_v45, %v136_v43 }
  0x39   :  { %v145_v50 = vpack.c.bf16 %v142_v47, %v141_v46 }
  0x3a   :  { %v146_v51 = vpack.c.bf16 %v144_v49, %v143_v48 }
  0x3b   :  { %v147_v52 = vunpack.c.l.bf16 %v145_v50  ;;  %v148_v53 = vunpack.c.h.bf16 %v145_v50 }
  0x3c   :  { %v149_v54 = vunpack.c.l.bf16 %v146_v51  ;;  %v150_v55 = vunpack.c.h.bf16 %v146_v51 }
  0x3d   :  { %417 = vlog2.f32 %v147_v52 }
  0x3e   :  { %419 = vlog2.f32 %v148_v53 }
  0x3f   :  { %421 = vlog2.f32 %v149_v54 }
  0x40   :  { %423 = vlog2.f32 %v150_v55 }
  0x43   :  { %v418_v56 = vpop.eup %417 }
  0x44   :  { %v420_v57 = vpop.eup %419  ;;  %v152_v58 = vmul.f32 0.6931472, %v418_v56 }
  0x45   :  { %v422_v59 = vpop.eup %421  ;;  %v154_v60 = vmul.f32 0.6931472, %v420_v57 }
  0x46   :  { %v424_v61 = vpop.eup %423  ;;  %v156_v62 = vmul.f32 0.6931472, %v422_v59 }
  0x47   :  { %v158_v63 = vmul.f32 0.6931472, %v424_v61  ;;  %v159_v0 = vpack.c.bf16 %v154_v60, %v152_v58 }
  0x49   :  { %v160_v1 = vpack.c.bf16 %v158_v63, %v156_v62  ;;  %v161_v2 = vunpack.c.l.bf16 %v159_v0  ;;  %v162_v3 = vunpack.c.h.bf16 %v159_v0 }
  0x4b   :  { %v163_v4 = vunpack.c.l.bf16 %v160_v1  ;;  %v164_v5 = vunpack.c.h.bf16 %v160_v1  ;;  %v165_v6 = vsub.f32 0.0, %v161_v2  ;;  %v166_v7 = vsub.f32 0.0, %v162_v3 }
  0x4d   :  { %v167_v8 = vsub.f32 0.0, %v163_v4  ;;  %v168_v9 = vsub.f32 0.0, %v164_v5  ;;  %v175_v10 = vmin.f32 %v165_v6, 5.0  ;;  %v176_v11 = vmin.f32 %v166_v7, 5.0 }
  0x4f   :  { %v177_v12 = vmin.f32 %v167_v8, 5.0  ;;  %v178_v13 = vmin.f32 %v168_v9, 5.0  ;;  %v179_v14 = vpack.c.bf16 %v176_v11, %v175_v10 }
  0x51   :  { %v180_v15 = vpack.c.bf16 %v178_v13, %v177_v12  ;;  %v181_v16 = vunpack.c.l.bf16 %v179_v14  ;;  %v182_v17 = vunpack.c.h.bf16 %v179_v14 }
  0x53   :  { %v183_v18 = vunpack.c.l.bf16 %v180_v15  ;;  %v184_v19 = vunpack.c.h.bf16 %v180_v15  ;;  %v411_v20 = vadd.f32 -2.5, %v181_v16  ;;  %v412_v21 = vadd.f32 -2.5, %v182_v17 }
  0x55   :  { %v413_v26 = vadd.f32 -2.5, %v183_v18  ;;  %v414_v27 = vadd.f32 -2.5, %v184_v19  ;;  %v189_v28 = vpack.c.bf16 %v412_v21, %v411_v20 }
  0x57   :  { %v190_v29 = vpack.c.bf16 %v414_v27, %v413_v26  ;;  %v516_v30 = vunpack.c.l.bf16 %v189_v28  ;;  %v518_v31 = vunpack.c.h.bf16 %v189_v28 }
  0x59   :  { %v520_v32 = vunpack.c.l.bf16 %v190_v29  ;;  %v522_v33 = vunpack.c.h.bf16 %v190_v29  ;;  %v195_v34 = vmul.f32 2.8056093e-08, %v516_v30  ;;  %v196_v35 = vmul.f32 2.8056093e-08, %v518_v31 }
  0x5b   :  { %v197_v36 = vmul.f32 2.8056093e-08, %v520_v32  ;;  %v198_v37 = vmul.f32 2.8056093e-08, %v522_v33  ;;  %v199_v38 = vpack.c.bf16 %v196_v35, %v195_v34 }
  0x5d   :  { %v200_v39 = vpack.c.bf16 %v198_v37, %v197_v36  ;;  %v201_v40 = vunpack.c.l.bf16 %v199_v38  ;;  %v202_v41 = vunpack.c.h.bf16 %v199_v38 }
  0x5f   :  { %v203_v42 = vunpack.c.l.bf16 %v200_v39  ;;  %v204_v43 = vunpack.c.h.bf16 %v200_v39  ;;  %v205_v44 = vadd.f32 3.427267e-07, %v201_v40  ;;  %v206_v45 = vadd.f32 3.427267e-07, %v202_v41 }
  0x61   :  { %v207_v46 = vadd.f32 3.427267e-07, %v203_v42  ;;  %v208_v47 = vadd.f32 3.427267e-07, %v204_v43  ;;  %v209_v48 = vpack.c.bf16 %v206_v45, %v205_v44 }
  0x63   :  { %v210_v49 = vpack.c.bf16 %v208_v47, %v207_v46  ;;  %v211_v50 = vunpack.c.l.bf16 %v209_v48  ;;  %v212_v51 = vunpack.c.h.bf16 %v209_v48 }
  0x65   :  { %v213_v52 = vunpack.c.l.bf16 %v210_v49  ;;  %v214_v53 = vunpack.c.h.bf16 %v210_v49  ;;  %v215_v54 = vmul.f32 %v211_v50, %v516_v30  ;;  %v216_v55 = vmul.f32 %v212_v51, %v518_v31 }
  0x67   :  { %v217_v56 = vmul.f32 %v213_v52, %v520_v32  ;;  %v218_v57 = vmul.f32 %v214_v53, %v522_v33  ;;  %v219_v58 = vpack.c.bf16 %v216_v55, %v215_v54 }
  0x69   :  { %v220_v59 = vpack.c.bf16 %v218_v57, %v217_v56  ;;  %v221_v60 = vunpack.c.l.bf16 %v219_v58  ;;  %v222_v61 = vunpack.c.h.bf16 %v219_v58 }
  0x6b   :  { %v223_v62 = vunpack.c.l.bf16 %v220_v59  ;;  %v224_v63 = vunpack.c.h.bf16 %v220_v59  ;;  %v225_v0 = vadd.f32 -3.516674e-06, %v221_v60  ;;  %v226_v1 = vadd.f32 -3.516674e-06, %v222_v61 }
  0x6d   :  { %v227_v2 = vadd.f32 -3.516674e-06, %v223_v62  ;;  %v228_v3 = vadd.f32 -3.516674e-06, %v224_v63  ;;  %v229_v4 = vpack.c.bf16 %v226_v1, %v225_v0 }
  0x6f   :  { %v230_v5 = vpack.c.bf16 %v228_v3, %v227_v2  ;;  %v231_v6 = vunpack.c.l.bf16 %v229_v4  ;;  %v232_v7 = vunpack.c.h.bf16 %v229_v4 }
  0x71   :  { %v233_v8 = vunpack.c.l.bf16 %v230_v5  ;;  %v234_v9 = vunpack.c.h.bf16 %v230_v5  ;;  %v235_v10 = vmul.f32 %v231_v6, %v516_v30  ;;  %v236_v11 = vmul.f32 %v232_v7, %v518_v31 }
  0x73   :  { %v237_v12 = vmul.f32 %v233_v8, %v520_v32  ;;  %v238_v13 = vmul.f32 %v234_v9, %v522_v33  ;;  %v239_v14 = vpack.c.bf16 %v236_v11, %v235_v10 }
  0x75   :  { %v240_v15 = vpack.c.bf16 %v238_v13, %v237_v12  ;;  %v241_v16 = vunpack.c.l.bf16 %v239_v14  ;;  %v242_v17 = vunpack.c.h.bf16 %v239_v14 }
  0x77   :  { %v243_v18 = vunpack.c.l.bf16 %v240_v15  ;;  %v244_v19 = vunpack.c.h.bf16 %v240_v15  ;;  %v245_v20 = vadd.f32 -4.3809414e-06, %v241_v16  ;;  %v246_v21 = vadd.f32 -4.3809414e-06, %v242_v17 }
  0x79   :  { %v247_v26 = vadd.f32 -4.3809414e-06, %v243_v18  ;;  %v248_v27 = vadd.f32 -4.3809414e-06, %v244_v19  ;;  %v249_v28 = vpack.c.bf16 %v246_v21, %v245_v20 }
  0x7b   :  { %v250_v29 = vpack.c.bf16 %v248_v27, %v247_v26  ;;  %v251_v34 = vunpack.c.l.bf16 %v249_v28  ;;  %v252_v35 = vunpack.c.h.bf16 %v249_v28 }
  0x7d   :  { %v253_v36 = vunpack.c.l.bf16 %v250_v29  ;;  %v254_v37 = vunpack.c.h.bf16 %v250_v29  ;;  %v255_v38 = vmul.f32 %v251_v34, %v516_v30  ;;  %v256_v39 = vmul.f32 %v252_v35, %v518_v31 }
  0x7f   :  { %v257_v40 = vmul.f32 %v253_v36, %v520_v32  ;;  %v258_v41 = vmul.f32 %v254_v37, %v522_v33  ;;  %v259_v42 = vpack.c.bf16 %v256_v39, %v255_v38 }
  0x81   :  { %v260_v43 = vpack.c.bf16 %v258_v41, %v257_v40  ;;  %v261_v44 = vunpack.c.l.bf16 %v259_v42  ;;  %v262_v45 = vunpack.c.h.bf16 %v259_v42 }
  0x83   :  { %v263_v46 = vunpack.c.l.bf16 %v260_v43  ;;  %v264_v47 = vunpack.c.h.bf16 %v260_v43  ;;  %v265_v48 = vadd.f32 0.00021839142, %v261_v44  ;;  %v266_v49 = vadd.f32 0.00021839142, %v262_v45 }
  0x85   :  { %v267_v50 = vadd.f32 0.00021839142, %v263_v46  ;;  %v268_v51 = vadd.f32 0.00021839142, %v264_v47  ;;  %v269_v52 = vpack.c.bf16 %v266_v49, %v265_v48 }
  0x87   :  { %v270_v53 = vpack.c.bf16 %v268_v51, %v267_v50  ;;  %v271_v54 = vunpack.c.l.bf16 %v269_v52  ;;  %v272_v55 = vunpack.c.h.bf16 %v269_v52 }
  0x89   :  { %v273_v56 = vunpack.c.l.bf16 %v270_v53  ;;  %v274_v57 = vunpack.c.h.bf16 %v270_v53  ;;  %v275_v58 = vmul.f32 %v271_v54, %v516_v30  ;;  %v276_v59 = vmul.f32 %v272_v55, %v518_v31 }
  0x8b   :  { %v277_v60 = vmul.f32 %v273_v56, %v520_v32  ;;  %v278_v61 = vmul.f32 %v274_v57, %v522_v33  ;;  %v279_v62 = vpack.c.bf16 %v276_v59, %v275_v58 }
  0x8d   :  { %v280_v63 = vpack.c.bf16 %v278_v61, %v277_v60  ;;  %v281_v0 = vunpack.c.l.bf16 %v279_v62  ;;  %v282_v1 = vunpack.c.h.bf16 %v279_v62 }
  0x8f   :  { %v283_v2 = vunpack.c.l.bf16 %v280_v63  ;;  %v284_v3 = vunpack.c.h.bf16 %v280_v63  ;;  %v285_v4 = vadd.f32 -0.0012512207, %v281_v0  ;;  %v286_v5 = vadd.f32 -0.0012512207, %v282_v1 }
  0x91   :  { %v287_v6 = vadd.f32 -0.0012512207, %v283_v2  ;;  %v288_v7 = vadd.f32 -0.0012512207, %v284_v3  ;;  %v289_v8 = vpack.c.bf16 %v286_v5, %v285_v4 }
  0x93   :  { %v290_v9 = vpack.c.bf16 %v288_v7, %v287_v6  ;;  %v291_v10 = vunpack.c.l.bf16 %v289_v8  ;;  %v292_v11 = vunpack.c.h.bf16 %v289_v8 }
  0x95   :  { %v293_v12 = vunpack.c.l.bf16 %v290_v9  ;;  %v294_v13 = vunpack.c.h.bf16 %v290_v9  ;;  %v295_v14 = vmul.f32 %v291_v10, %v516_v30  ;;  %v296_v15 = vmul.f32 %v292_v11, %v518_v31 }
  0x97   :  { %v297_v16 = vmul.f32 %v293_v12, %v520_v32  ;;  %v298_v17 = vmul.f32 %v294_v13, %v522_v33  ;;  %v299_v18 = vpack.c.bf16 %v296_v15, %v295_v14 }
  0x99   :  { %v300_v19 = vpack.c.bf16 %v298_v17, %v297_v16  ;;  %v301_v20 = vunpack.c.l.bf16 %v299_v18  ;;  %v302_v21 = vunpack.c.h.bf16 %v299_v18 }
  0x9b   :  { %v303_v26 = vunpack.c.l.bf16 %v300_v19  ;;  %v304_v27 = vunpack.c.h.bf16 %v300_v19  ;;  %v305_v28 = vadd.f32 -0.004180908, %v301_v20  ;;  %v306_v29 = vadd.f32 -0.004180908, %v302_v21 }
  0x9d   :  { %v307_v34 = vadd.f32 -0.004180908, %v303_v26  ;;  %v308_v35 = vadd.f32 -0.004180908, %v304_v27  ;;  %v309_v36 = vpack.c.bf16 %v306_v29, %v305_v28 }
  0x9f   :  { %v310_v37 = vpack.c.bf16 %v308_v35, %v307_v34  ;;  %v311_v38 = vunpack.c.l.bf16 %v309_v36  ;;  %v312_v39 = vunpack.c.h.bf16 %v309_v36 }
  0xa1   :  { %v313_v40 = vunpack.c.l.bf16 %v310_v37  ;;  %v314_v41 = vunpack.c.h.bf16 %v310_v37  ;;  %v315_v42 = vmul.f32 %v311_v38, %v516_v30  ;;  %v316_v43 = vmul.f32 %v312_v39, %v518_v31 }
  0xa3   :  { %v317_v44 = vmul.f32 %v313_v40, %v520_v32  ;;  %v318_v45 = vmul.f32 %v314_v41, %v522_v33  ;;  %v319_v46 = vpack.c.bf16 %v316_v43, %v315_v42 }
  0xa5   :  { %v320_v47 = vpack.c.bf16 %v318_v45, %v317_v44  ;;  %v321_v48 = vunpack.c.l.bf16 %v319_v46  ;;  %v322_v49 = vunpack.c.h.bf16 %v319_v46 }
  0xa7   :  { %v323_v50 = vunpack.c.l.bf16 %v320_v47  ;;  %v324_v51 = vunpack.c.h.bf16 %v320_v47  ;;  %v325_v52 = vadd.f32 0.24707031, %v321_v48  ;;  %v326_v53 = vadd.f32 0.24707031, %v322_v49 }
  0xa9   :  { %v327_v54 = vadd.f32 0.24707031, %v323_v50  ;;  %v328_v55 = vadd.f32 0.24707031, %v324_v51  ;;  %v329_v56 = vpack.c.bf16 %v326_v53, %v325_v52 }
  0xab   :  { %v330_v57 = vpack.c.bf16 %v328_v55, %v327_v54  ;;  %v331_v58 = vunpack.c.l.bf16 %v329_v56  ;;  %v332_v59 = vunpack.c.h.bf16 %v329_v56 }
  0xad   :  { %v333_v60 = vunpack.c.l.bf16 %v330_v57  ;;  %v334_v61 = vunpack.c.h.bf16 %v330_v57  ;;  %v335_v62 = vmul.f32 %v331_v58, %v516_v30  ;;  %v336_v63 = vmul.f32 %v332_v59, %v518_v31 }
  0xaf   :  { %v337_v0 = vmul.f32 %v333_v60, %v520_v32  ;;  %v338_v1 = vmul.f32 %v334_v61, %v522_v33  ;;  %v339_v2 = vpack.c.bf16 %v336_v63, %v335_v62 }
  0xb1   :  { %v340_v3 = vpack.c.bf16 %v338_v1, %v337_v0  ;;  %v341_v4 = vunpack.c.l.bf16 %v339_v2  ;;  %v342_v5 = vunpack.c.h.bf16 %v339_v2 }
  0xb3   :  { %v343_v6 = vunpack.c.l.bf16 %v340_v3  ;;  %v344_v7 = vunpack.c.h.bf16 %v340_v3  ;;  %v345_v8 = vadd.f32 1.5, %v341_v4  ;;  %v346_v9 = vadd.f32 1.5, %v342_v5 }
  0xb5   :  { %v347_v10 = vadd.f32 1.5, %v343_v6  ;;  %v348_v11 = vadd.f32 1.5, %v344_v7  ;;  %v349_v12 = vpack.c.bf16 %v346_v9, %v345_v8 }
  0xb7   :  { %v350_v13 = vpack.c.bf16 %v348_v11, %v347_v10  ;;  %v351_v14 = vunpack.c.l.bf16 %v349_v12  ;;  %v352_v30 = vunpack.c.h.bf16 %v349_v12 }
  0xb9   :  { %v353_v15 = vunpack.c.l.bf16 %v350_v13  ;;  %v354_v31 = vunpack.c.h.bf16 %v350_v13  ;;  %v355_v32 = vmul.f32 %v351_v14, %v500_v22  ;;  %v356_v33 = vmul.f32 %v352_v30, %v502_v23  ;;  %v371_v23 = vld [vmem:[#allocation3] sm:$0xff] }
  0xbb   :  { %v357_v16 = vmul.f32 %v353_v15, %v504_v24  ;;  %v358_v17 = vmul.f32 %v354_v31, %v506_v25  ;;  %v359_v18 = vpack.c.bf16 %v356_v33, %v355_v32  ;;  %v372_v25 = vld [vmem:[#allocation3 + $0x8] sm:$0xff] }
  0xbd   :  { %v360_v19 = vpack.c.bf16 %v358_v17, %v357_v16  ;;  %v361_v20 = vunpack.c.l.bf16 %v359_v18  ;;  %v362_v21 = vunpack.c.h.bf16 %v359_v18 }
  0xbf   :  { %v363_v26 = vunpack.c.l.bf16 %v360_v19  ;;  %v364_v27 = vunpack.c.h.bf16 %v360_v19  ;;  %v365_v28 = vmul.f32 1.4140625, %v361_v20  ;;  %v366_v29 = vmul.f32 1.4140625, %v362_v21 }
  0xc1   :  { %v367_v34 = vmul.f32 1.4140625, %v363_v26  ;;  %v368_v35 = vmul.f32 1.4140625, %v364_v27  ;;  %v369_v36 = vpack.c.bf16 %v366_v29, %v365_v28 }
  0xc3   :  { %v370_v37 = vpack.c.bf16 %v368_v35, %v367_v34  ;;  %v373_v38 = vunpack.c.l.bf16 %v369_v36  ;;  %v374_v22 = vunpack.c.h.bf16 %v369_v36 }
  0xc5   :  { %v375_v39 = vunpack.c.l.bf16 %v370_v37  ;;  %v376_v24 = vunpack.c.h.bf16 %v370_v37  ;;  %v381_v40 = vrot.slane %v374_v22, 4 }
  0xc7   :  { %v382_v41 = vrot.slane %v376_v24, 4  ;;  %v384_v42 = vsel %vm383_vm0, %v373_v38, %v381_v40 }
  0xc8   :  { %v388_v43 = vmul.f32 %v384_v42, %v371_v23 }
  0xc9   :  { %v385_v44 = vsel %vm383_vm0, %v375_v39, %v382_v41 }
  0xca   :  { %v389_v45 = vmul.f32 %v385_v44, %v372_v25  ;;  %v390_v46 = vadd.f32 %v388_v43, %v371_v23 }
  0xcc   :  { %v391_v47 = vadd.f32 %v389_v45, %v372_v25  ;;  %392 = vst [vmem:[#allocation6] sm:$0xff] %v390_v46 }
  0xce   :  { %393 = vst [vmem:[#allocation6 + $0x8] sm:$0xff] %v391_v47 }
  0xcf   :  { %404 = dma.vmem_to_hbm [thread:$0]  %s400_s1, 256, %s402_s19, [#allocation5]  }
  0xd0   :  { %475 = dma.done.wait [#allocation5], 256  }
  0xd1   :  { %476 = vsyncadd [#allocation5], 4294967040 }
  0xd2   :  { %409 = vsyncpa [#allocation4], 1 }
  0xd3   :  { %410 = vsyncpa [#allocation5], 1 }

</bundles_post_ra>
